<compile_context>
chip_gen: v5e
topology: v5e:2x2
jax: 0.10.0
libtpu: 0.0.40
codegen_flags: <defaults>
</compile_context>

<pallas_src>
import functools

import numpy as np
import jax
import jax.numpy as jnp
from jax import lax
from jax.experimental import pallas as pl
from jax.experimental.pallas import tpu as pltpu


def esn_recurrence_kernel(pre_in_ref, h0_ref, wr_t_ref, h_seq_ref, h_scratch,
                          *, alpha, tt):
    """One grid step == TT timesteps of the leaky reservoir recurrence.

    pre_in_ref : (TT, B, R)  precomputed x_t @ W_in^T for this time-chunk
    h0_ref     : (B, R)      initial state (only read at chunk 0)
    wr_t_ref   : (R, R)      W_r^T, resident in VMEM across the whole grid
    h_seq_ref  : (TT, B, R)  output slots for h_t (lane-dense, R mult. of 128)
    h_scratch  : (B, R)      VMEM carry of the reservoir state across chunks
    """
    c = pl.program_id(0)

    @pl.when(c == 0)
    def _():
        h_scratch[...] = h0_ref[...]

    wr = wr_t_ref[...]                                        # (R, R), resident
    one_minus_alpha = jnp.float32(1.0 - alpha)
    a = jnp.float32(alpha)

    def body(s, h):
        pre = pre_in_ref[s] + jnp.dot(h, wr,
                                      preferred_element_type=jnp.float32)
        h_new = h * one_minus_alpha + a * jnp.tanh(pre)
        h_seq_ref[s] = h_new
        return h_new

    # unroll=True: short fixed trip count -> full LLO scheduling visibility.
    h_final = lax.fori_loop(0, tt, body, h_scratch[...], unroll=True)
    h_scratch[...] = h_final


def _pick_time_chunk(T, max_tt=8):
    """Largest divisor of T that is <= max_tt (>=1)."""
    for tt in range(min(max_tt, T), 0, -1):
        if T % tt == 0:
            return tt
    return 1


@functools.partial(jax.jit, static_argnames=("alpha",))
def esn_forward_sequence(x_seq, h0, win_t, wr_t, wout_t, *, alpha):
    """Run the ESN over a whole sequence. Returns (out_seq, h_seq)."""
    T, B, In = x_seq.shape
    R = h0.shape[-1]
    tt = _pick_time_chunk(T)

    # --- hoisted, time-batched input projection: one MXU-shaped matmul ------
    pre_in = jnp.dot(x_seq.reshape(T * B, In), win_t,
                     preferred_element_type=jnp.float32).reshape(T, B, R)

    # --- fused sequential recurrence, TT timesteps per grid step -------------
    h_seq = pl.pallas_call(
        functools.partial(esn_recurrence_kernel, alpha=float(alpha), tt=tt),
        out_shape=jax.ShapeDtypeStruct((T, B, R), jnp.float32),
        grid=(T // tt,),
        in_specs=[
            pl.BlockSpec((tt, B, R), lambda c: (c, 0, 0)),  # pre_in chunk
            pl.BlockSpec((B, R), lambda c: (0, 0)),         # h0, resident
            pl.BlockSpec((R, R), lambda c: (0, 0)),         # W_r^T, resident
        ],
        out_specs=pl.BlockSpec((tt, B, R), lambda c: (c, 0, 0)),
        scratch_shapes=[pltpu.VMEM((B, R), jnp.float32)],    # h carry in VMEM
        compiler_params=pltpu.CompilerParams(
            # recurrence is sequential in time (scratch carry) -> arbitrary
            dimension_semantics=("arbitrary",)),
    )(pre_in, h0, wr_t)

    # --- time-batched readout: one MXU-shaped matmul, no masked tiny stores --
    out_seq = jnp.dot(h_seq.reshape(T * B, R), wout_t,
                      preferred_element_type=jnp.float32).reshape(T, B, In)
    return out_seq, h_seq


def init_esn_weights(key, input_size, reservoir_size, spectral_radius=0.9):
    """Deterministic re-implementation of ESN.init_weight().

    Returns weights already transposed for the kernel-side layout:
      win_t  = W_in^T  (In, R)
      wr_t   = W_r^T   (R, R)
      wout_t = W_out^T (R, In)
    """
    k1, k2, k3, k4, k5 = jax.random.split(key, 5)

    # InRs: uniform(-0.1, 0.1) with 5% sparsity mask
    w_in = jax.random.uniform(k1, (reservoir_size, input_size),
                              minval=-0.1, maxval=0.1, dtype=jnp.float32)
    mask_in = (jax.random.uniform(k2, (reservoir_size, input_size)) < 0.05)
    w_in = w_in * mask_in.astype(jnp.float32)

    # RsRs: normal(std=0.1) with 5% sparsity mask, rescaled to spectral radius
    w_r = 0.1 * jax.random.normal(k3, (reservoir_size, reservoir_size),
                                  dtype=jnp.float32)
    mask_r = (jax.random.uniform(k4, (reservoir_size, reservoir_size)) < 0.05)
    w_r = w_r * mask_r.astype(jnp.float32)
    # eigvals unsupported on TPU backend -> host numpy (init-time glue only)
    eig = np.linalg.eigvals(np.asarray(w_r))
    rho = max(float(np.max(np.abs(eig))), 1e-12)
    w_r = w_r * (spectral_radius / rho)

    # readout: normal(0, 1)
    w_out = jax.random.normal(k5, (input_size, reservoir_size),
                              dtype=jnp.float32)

    # store pre-transposed once (no per-call transpose copies)
    return w_in.T, w_r.T, w_out.T


if __name__ == "__main__":
    input_size = 3        # Lorenz system: 3 state variables
    reservoir_size = 128  # lane-dense (multiple of 128)
    batch = 8             # sublane-aligned; each row evolves its own reservoir
    seq_len = 16          # timesteps fused into one pallas_call
    alpha = 0.3
    spectral_radius = 0.9

    key = jax.random.PRNGKey(0)
    kx, kw = jax.random.split(key)

    win_t, wr_t, wout_t = init_esn_weights(
        kw, input_size, reservoir_size, spectral_radius=spectral_radius)

    x_seq = jax.random.normal(kx, (seq_len, batch, input_size),
                              dtype=jnp.float32)
    # self.h = torch.zeros(reservoir_size); broadcast across batch rows
    h0 = jnp.zeros((batch, reservoir_size), dtype=jnp.float32)

    out_seq, h_seq = esn_forward_sequence(x_seq, h0, win_t, wr_t, wout_t,
                                          alpha=alpha)
    out_seq = jax.block_until_ready(out_seq)
    h_seq = jax.block_until_ready(h_seq)

    # pure-JAX step-by-step reference (identical to calling the PyTorch
    # forward once per timestep)
    h_ref = h0
    outs_ref, hs_ref = [], []
    for t in range(seq_len):
        pre = x_seq[t] @ win_t + h_ref @ wr_t
        h_ref = h_ref * (1.0 - alpha) + alpha * jnp.tanh(pre)
        hs_ref.append(h_ref)
        outs_ref.append(h_ref @ wout_t)
    out_ref = jnp.stack(outs_ref)
    h_ref_seq = jnp.stack(hs_ref)

    assert jnp.allclose(h_seq, h_ref_seq, atol=1e-3, rtol=1e-3)
    assert jnp.allclose(out_seq, out_ref, atol=1e-3, rtol=1e-3)

    print("KERNEL_OK")
</pallas_src>

<mosaic_0001>
module attributes {stable_mosaic.version = 11 : i64} {
  func.func @esn_recurrence_kernel(%arg0: i32, %arg1: memref<8x8x128xf32, #tpu.memory_space<vmem>>, %arg2: memref<8x128xf32, #tpu.memory_space<vmem>>, %arg3: memref<128x128xf32, #tpu.memory_space<vmem>>, %arg4: memref<8x8x128xf32, #tpu.memory_space<vmem>>, %arg5: memref<8x128xf32, #tpu.memory_space<vmem>>) attributes {dimension_semantics = [#tpu.dimension_semantics<arbitrary>], iteration_bounds = array<i64: 2>, scalar_prefetch = 0 : i64, scratch_operands = 1 : i64, tpu.core_type = #tpu.core_type<tc>, window_params = [{transform_indices = @transform_0, window_bounds = array<i64: 8, 8, 128>}, {pipeline_mode = #tpu.pipeline_mode<synchronous>, transform_indices = @transform_1, window_bounds = array<i64: 8, 128>}, {pipeline_mode = #tpu.pipeline_mode<synchronous>, transform_indices = @transform_2, window_bounds = array<i64: 128, 128>}, {transform_indices = @transform_3, window_bounds = array<i64: 8, 8, 128>}]} {
    %c0_i32 = arith.constant 0 : i32
    %0 = arith.cmpi eq, %arg0, %c0_i32 : i32
    %1 = arith.extui %0 : i1 to i32
    %c0_i32_0 = arith.constant 0 : i32
    %2 = arith.cmpi ne, %1, %c0_i32_0 : i32
    scf.if %2 {
      %c0_48 = arith.constant 0 : index
      %c0_49 = arith.constant 0 : index
      %126 = vector.load %arg2[%c0_48, %c0_49] : memref<8x128xf32, #tpu.memory_space<vmem>>, vector<8x128xf32>
      %c0_50 = arith.constant 0 : index
      %c0_51 = arith.constant 0 : index
      %127 = vector.load %arg5[%c0_50, %c0_51] : memref<8x128xf32, #tpu.memory_space<vmem>>, vector<8x128xf32>
      tpu.vector_store %arg5[%c0_50, %c0_51], %126 {strides = array<i32>} : memref<8x128xf32, #tpu.memory_space<vmem>>, vector<8x128xf32>,
    } else {
    }
    %c0 = arith.constant 0 : index
    %c0_1 = arith.constant 0 : index
    %3 = vector.load %arg3[%c0, %c0_1] : memref<128x128xf32, #tpu.memory_space<vmem>>, vector<128x128xf32>
    %c0_2 = arith.constant 0 : index
    %c0_3 = arith.constant 0 : index
    %4 = vector.load %arg5[%c0_2, %c0_3] : memref<8x128xf32, #tpu.memory_space<vmem>>, vector<8x128xf32>
    %cst = arith.constant 0.699999988 : f32
    %cst_4 = arith.constant 3.000000e-01 : f32
    %c0_i32_5 = arith.constant 0 : i32
    %5 = arith.index_cast %c0_i32_5 : i32 to index
    %c0_6 = arith.constant 0 : index
    %c0_7 = arith.constant 0 : index
    %6 = vector.load %arg1[%5, %c0_6, %c0_7] : memref<8x8x128xf32, #tpu.memory_space<vmem>>, vector<1x8x128xf32>
    %7 = vector.shape_cast %6 : vector<1x8x128xf32> to vector<8x128xf32>
    %cst_8 = arith.constant dense<0.000000e+00> : vector<8x128xf32>
    %8 = tpu.matmul %4, %3, %cst_8 {dimension_numbers = #tpu.dot_dimension_numbers<[1], [0], [0], [1], [0, 0, 1, 1], [], []>} : vector<8x128xf32>, vector<128x128xf32>, vector<8x128xf32> -> vector<8x128xf32>
    %9 = arith.addf %7, %8 : vector<8x128xf32>
    %10 = vector.broadcast %cst : f32 to vector<8x128xf32>
    %11 = arith.mulf %4, %10 : vector<8x128xf32>
    %12 = math.tanh %9 : vector<8x128xf32>
    %13 = vector.broadcast %cst_4 : f32 to vector<8x128xf32>
    %14 = arith.mulf %13, %12 : vector<8x128xf32>
    %15 = arith.addf %11, %14 : vector<8x128xf32>
    %16 = arith.index_cast %c0_i32_5 : i32 to index
    %c0_9 = arith.constant 0 : index
    %c0_10 = arith.constant 0 : index
    %17 = vector.load %arg4[%16, %c0_9, %c0_10] : memref<8x8x128xf32, #tpu.memory_space<vmem>>, vector<1x8x128xf32>
    %18 = vector.shape_cast %17 : vector<1x8x128xf32> to vector<8x128xf32>
    %19 = vector.shape_cast %15 : vector<8x128xf32> to vector<1x8x128xf32>
    tpu.vector_store %arg4[%16, %c0_9, %c0_10], %19 {strides = array<i32>} : memref<8x8x128xf32, #tpu.memory_space<vmem>>, vector<1x8x128xf32>,
    %c1_i32 = arith.constant 1 : i32
    %20 = arith.index_cast %c1_i32 : i32 to index
    %c0_11 = arith.constant 0 : index
    %c0_12 = arith.constant 0 : index
    %21 = vector.load %arg1[%20, %c0_11, %c0_12] : memref<8x8x128xf32, #tpu.memory_space<vmem>>, vector<1x8x128xf32>
    %22 = vector.shape_cast %21 : vector<1x8x128xf32> to vector<8x128xf32>
    %cst_13 = arith.constant dense<0.000000e+00> : vector<8x128xf32>
    %23 = tpu.matmul %15, %3, %cst_13 {dimension_numbers = #tpu.dot_dimension_numbers<[1], [0], [0], [1], [0, 0, 1, 1], [], []>} : vector<8x128xf32>, vector<128x128xf32>, vector<8x128xf32> -> vector<8x128xf32>
    %24 = arith.addf %22, %23 : vector<8x128xf32>
    %25 = vector.broadcast %cst : f32 to vector<8x128xf32>
    %26 = arith.mulf %15, %25 : vector<8x128xf32>
    %27 = math.tanh %24 : vector<8x128xf32>
    %28 = vector.broadcast %cst_4 : f32 to vector<8x128xf32>
    %29 = arith.mulf %28, %27 : vector<8x128xf32>
    %30 = arith.addf %26, %29 : vector<8x128xf32>
    %31 = arith.index_cast %c1_i32 : i32 to index
    %c0_14 = arith.constant 0 : index
    %c0_15 = arith.constant 0 : index
    %32 = vector.load %arg4[%31, %c0_14, %c0_15] : memref<8x8x128xf32, #tpu.memory_space<vmem>>, vector<1x8x128xf32>
    %33 = vector.shape_cast %32 : vector<1x8x128xf32> to vector<8x128xf32>
    %34 = vector.shape_cast %30 : vector<8x128xf32> to vector<1x8x128xf32>
    tpu.vector_store %arg4[%31, %c0_14, %c0_15], %34 {strides = array<i32>} : memref<8x8x128xf32, #tpu.memory_space<vmem>>, vector<1x8x128xf32>,
    %c2_i32 = arith.constant 2 : i32
    %35 = arith.index_cast %c2_i32 : i32 to index
    %c0_16 = arith.constant 0 : index
    %c0_17 = arith.constant 0 : index
    %36 = vector.load %arg1[%35, %c0_16, %c0_17] : memref<8x8x128xf32, #tpu.memory_space<vmem>>, vector<1x8x128xf32>
    %37 = vector.shape_cast %36 : vector<1x8x128xf32> to vector<8x128xf32>
    %cst_18 = arith.constant dense<0.000000e+00> : vector<8x128xf32>
    %38 = tpu.matmul %30, %3, %cst_18 {dimension_numbers = #tpu.dot_dimension_numbers<[1], [0], [0], [1], [0, 0, 1, 1], [], []>} : vector<8x128xf32>, vector<128x128xf32>, vector<8x128xf32> -> vector<8x128xf32>
    %39 = arith.addf %37, %38 : vector<8x128xf32>
    %40 = vector.broadcast %cst : f32 to vector<8x128xf32>
    %41 = arith.mulf %30, %40 : vector<8x128xf32>
    %42 = math.tanh %39 : vector<8x128xf32>
    %43 = vector.broadcast %cst_4 : f32 to vector<8x128xf32>
    %44 = arith.mulf %43, %42 : vector<8x128xf32>
    %45 = arith.addf %41, %44 : vector<8x128xf32>
    %46 = arith.index_cast %c2_i32 : i32 to index
    %c0_19 = arith.constant 0 : index
    %c0_20 = arith.constant 0 : index
    %47 = vector.load %arg4[%46, %c0_19, %c0_20] : memref<8x8x128xf32, #tpu.memory_space<vmem>>, vector<1x8x128xf32>
    %48 = vector.shape_cast %47 : vector<1x8x128xf32> to vector<8x128xf32>
    %49 = vector.shape_cast %45 : vector<8x128xf32> to vector<1x8x128xf32>
    tpu.vector_store %arg4[%46, %c0_19, %c0_20], %49 {strides = array<i32>} : memref<8x8x128xf32, #tpu.memory_space<vmem>>, vector<1x8x128xf32>,
    %c3_i32 = arith.constant 3 : i32
    %50 = arith.index_cast %c3_i32 : i32 to index
    %c0_21 = arith.constant 0 : index
    %c0_22 = arith.constant 0 : index
    %51 = vector.load %arg1[%50, %c0_21, %c0_22] : memref<8x8x128xf32, #tpu.memory_space<vmem>>, vector<1x8x128xf32>
    %52 = vector.shape_cast %51 : vector<1x8x128xf32> to vector<8x128xf32>
    %cst_23 = arith.constant dense<0.000000e+00> : vector<8x128xf32>
    %53 = tpu.matmul %45, %3, %cst_23 {dimension_numbers = #tpu.dot_dimension_numbers<[1], [0], [0], [1], [0, 0, 1, 1], [], []>} : vector<8x128xf32>, vector<128x128xf32>, vector<8x128xf32> -> vector<8x128xf32>
    %54 = arith.addf %52, %53 : vector<8x128xf32>
    %55 = vector.broadcast %cst : f32 to vector<8x128xf32>
    %56 = arith.mulf %45, %55 : vector<8x128xf32>
    %57 = math.tanh %54 : vector<8x128xf32>
    %58 = vector.broadcast %cst_4 : f32 to vector<8x128xf32>
    %59 = arith.mulf %58, %57 : vector<8x128xf32>
    %60 = arith.addf %56, %59 : vector<8x128xf32>
    %61 = arith.index_cast %c3_i32 : i32 to index
    %c0_24 = arith.constant 0 : index
    %c0_25 = arith.constant 0 : index
    %62 = vector.load %arg4[%61, %c0_24, %c0_25] : memref<8x8x128xf32, #tpu.memory_space<vmem>>, vector<1x8x128xf32>
    %63 = vector.shape_cast %62 : vector<1x8x128xf32> to vector<8x128xf32>
    %64 = vector.shape_cast %60 : vector<8x128xf32> to vector<1x8x128xf32>
    tpu.vector_store %arg4[%61, %c0_24, %c0_25], %64 {strides = array<i32>} : memref<8x8x128xf32, #tpu.memory_space<vmem>>, vector<1x8x128xf32>,
    %c4_i32 = arith.constant 4 : i32
    %65 = arith.index_cast %c4_i32 : i32 to index
    %c0_26 = arith.constant 0 : index
    %c0_27 = arith.constant 0 : index
    %66 = vector.load %arg1[%65, %c0_26, %c0_27] : memref<8x8x128xf32, #tpu.memory_space<vmem>>, vector<1x8x128xf32>
    %67 = vector.shape_cast %66 : vector<1x8x128xf32> to vector<8x128xf32>
    %cst_28 = arith.constant dense<0.000000e+00> : vector<8x128xf32>
    %68 = tpu.matmul %60, %3, %cst_28 {dimension_numbers = #tpu.dot_dimension_numbers<[1], [0], [0], [1], [0, 0, 1, 1], [], []>} : vector<8x128xf32>, vector<128x128xf32>, vector<8x128xf32> -> vector<8x128xf32>
    %69 = arith.addf %67, %68 : vector<8x128xf32>
    %70 = vector.broadcast %cst : f32 to vector<8x128xf32>
    %71 = arith.mulf %60, %70 : vector<8x128xf32>
    %72 = math.tanh %69 : vector<8x128xf32>
    %73 = vector.broadcast %cst_4 : f32 to vector<8x128xf32>
    %74 = arith.mulf %73, %72 : vector<8x128xf32>
    %75 = arith.addf %71, %74 : vector<8x128xf32>
    %76 = arith.index_cast %c4_i32 : i32 to index
    %c0_29 = arith.constant 0 : index
    %c0_30 = arith.constant 0 : index
    %77 = vector.load %arg4[%76, %c0_29, %c0_30] : memref<8x8x128xf32, #tpu.memory_space<vmem>>, vector<1x8x128xf32>
    %78 = vector.shape_cast %77 : vector<1x8x128xf32> to vector<8x128xf32>
    %79 = vector.shape_cast %75 : vector<8x128xf32> to vector<1x8x128xf32>
    tpu.vector_store %arg4[%76, %c0_29, %c0_30], %79 {strides = array<i32>} : memref<8x8x128xf32, #tpu.memory_space<vmem>>, vector<1x8x128xf32>,
    %c5_i32 = arith.constant 5 : i32
    %80 = arith.index_cast %c5_i32 : i32 to index
    %c0_31 = arith.constant 0 : index
    %c0_32 = arith.constant 0 : index
    %81 = vector.load %arg1[%80, %c0_31, %c0_32] : memref<8x8x128xf32, #tpu.memory_space<vmem>>, vector<1x8x128xf32>
    %82 = vector.shape_cast %81 : vector<1x8x128xf32> to vector<8x128xf32>
    %cst_33 = arith.constant dense<0.000000e+00> : vector<8x128xf32>
    %83 = tpu.matmul %75, %3, %cst_33 {dimension_numbers = #tpu.dot_dimension_numbers<[1], [0], [0], [1], [0, 0, 1, 1], [], []>} : vector<8x128xf32>, vector<128x128xf32>, vector<8x128xf32> -> vector<8x128xf32>
    %84 = arith.addf %82, %83 : vector<8x128xf32>
    %85 = vector.broadcast %cst : f32 to vector<8x128xf32>
    %86 = arith.mulf %75, %85 : vector<8x128xf32>
    %87 = math.tanh %84 : vector<8x128xf32>
    %88 = vector.broadcast %cst_4 : f32 to vector<8x128xf32>
    %89 = arith.mulf %88, %87 : vector<8x128xf32>
    %90 = arith.addf %86, %89 : vector<8x128xf32>
    %91 = arith.index_cast %c5_i32 : i32 to index
    %c0_34 = arith.constant 0 : index
    %c0_35 = arith.constant 0 : index
    %92 = vector.load %arg4[%91, %c0_34, %c0_35] : memref<8x8x128xf32, #tpu.memory_space<vmem>>, vector<1x8x128xf32>
    %93 = vector.shape_cast %92 : vector<1x8x128xf32> to vector<8x128xf32>
    %94 = vector.shape_cast %90 : vector<8x128xf32> to vector<1x8x128xf32>
    tpu.vector_store %arg4[%91, %c0_34, %c0_35], %94 {strides = array<i32>} : memref<8x8x128xf32, #tpu.memory_space<vmem>>, vector<1x8x128xf32>,
    %c6_i32 = arith.constant 6 : i32
    %95 = arith.index_cast %c6_i32 : i32 to index
    %c0_36 = arith.constant 0 : index
    %c0_37 = arith.constant 0 : index
    %96 = vector.load %arg1[%95, %c0_36, %c0_37] : memref<8x8x128xf32, #tpu.memory_space<vmem>>, vector<1x8x128xf32>
    %97 = vector.shape_cast %96 : vector<1x8x128xf32> to vector<8x128xf32>
    %cst_38 = arith.constant dense<0.000000e+00> : vector<8x128xf32>
    %98 = tpu.matmul %90, %3, %cst_38 {dimension_numbers = #tpu.dot_dimension_numbers<[1], [0], [0], [1], [0, 0, 1, 1], [], []>} : vector<8x128xf32>, vector<128x128xf32>, vector<8x128xf32> -> vector<8x128xf32>
    %99 = arith.addf %97, %98 : vector<8x128xf32>
    %100 = vector.broadcast %cst : f32 to vector<8x128xf32>
    %101 = arith.mulf %90, %100 : vector<8x128xf32>
    %102 = math.tanh %99 : vector<8x128xf32>
    %103 = vector.broadcast %cst_4 : f32 to vector<8x128xf32>
    %104 = arith.mulf %103, %102 : vector<8x128xf32>
    %105 = arith.addf %101, %104 : vector<8x128xf32>
    %106 = arith.index_cast %c6_i32 : i32 to index
    %c0_39 = arith.constant 0 : index
    %c0_40 = arith.constant 0 : index
    %107 = vector.load %arg4[%106, %c0_39, %c0_40] : memref<8x8x128xf32, #tpu.memory_space<vmem>>, vector<1x8x128xf32>
    %108 = vector.shape_cast %107 : vector<1x8x128xf32> to vector<8x128xf32>
    %109 = vector.shape_cast %105 : vector<8x128xf32> to vector<1x8x128xf32>
    tpu.vector_store %arg4[%106, %c0_39, %c0_40], %109 {strides = array<i32>} : memref<8x8x128xf32, #tpu.memory_space<vmem>>, vector<1x8x128xf32>,
    %c7_i32 = arith.constant 7 : i32
    %110 = arith.index_cast %c7_i32 : i32 to index
    %c0_41 = arith.constant 0 : index
    %c0_42 = arith.constant 0 : index
    %111 = vector.load %arg1[%110, %c0_41, %c0_42] : memref<8x8x128xf32, #tpu.memory_space<vmem>>, vector<1x8x128xf32>
    %112 = vector.shape_cast %111 : vector<1x8x128xf32> to vector<8x128xf32>
    %cst_43 = arith.constant dense<0.000000e+00> : vector<8x128xf32>
    %113 = tpu.matmul %105, %3, %cst_43 {dimension_numbers = #tpu.dot_dimension_numbers<[1], [0], [0], [1], [0, 0, 1, 1], [], []>} : vector<8x128xf32>, vector<128x128xf32>, vector<8x128xf32> -> vector<8x128xf32>
    %114 = arith.addf %112, %113 : vector<8x128xf32>
    %115 = vector.broadcast %cst : f32 to vector<8x128xf32>
    %116 = arith.mulf %105, %115 : vector<8x128xf32>
    %117 = math.tanh %114 : vector<8x128xf32>
    %118 = vector.broadcast %cst_4 : f32 to vector<8x128xf32>
    %119 = arith.mulf %118, %117 : vector<8x128xf32>
    %120 = arith.addf %116, %119 : vector<8x128xf32>
    %121 = arith.index_cast %c7_i32 : i32 to index
    %c0_44 = arith.constant 0 : index
    %c0_45 = arith.constant 0 : index
    %122 = vector.load %arg4[%121, %c0_44, %c0_45] : memref<8x8x128xf32, #tpu.memory_space<vmem>>, vector<1x8x128xf32>
    %123 = vector.shape_cast %122 : vector<1x8x128xf32> to vector<8x128xf32>
    %124 = vector.shape_cast %120 : vector<8x128xf32> to vector<1x8x128xf32>
    tpu.vector_store %arg4[%121, %c0_44, %c0_45], %124 {strides = array<i32>} : memref<8x8x128xf32, #tpu.memory_space<vmem>>, vector<1x8x128xf32>,
    %c8_i32 = arith.constant 8 : i32
    %c0_46 = arith.constant 0 : index
    %c0_47 = arith.constant 0 : index
    %125 = vector.load %arg5[%c0_46, %c0_47] : memref<8x128xf32, #tpu.memory_space<vmem>>, vector<8x128xf32>
    tpu.vector_store %arg5[%c0_46, %c0_47], %120 {strides = array<i32>} : memref<8x128xf32, #tpu.memory_space<vmem>>, vector<8x128xf32>,
    return
  }
  func.func @transform_0(%arg0: i32) -> (i32, i32, i32) {
    %c0_i32 = arith.constant 0 : i32
    %c0_i32_0 = arith.constant 0 : i32
    %c0_i32_1 = arith.constant 0 : i32
    return %arg0, %c0_i32, %c0_i32_0 : i32, i32, i32
  }
  func.func @transform_1(%arg0: i32) -> (i32, i32) {
    %c0_i32 = arith.constant 0 : i32
    %c0_i32_0 = arith.constant 0 : i32
    %c0_i32_1 = arith.constant 0 : i32
    return %c0_i32, %c0_i32_0 : i32, i32
  }
  func.func @transform_2(%arg0: i32) -> (i32, i32) {
    %c0_i32 = arith.constant 0 : i32
    %c0_i32_0 = arith.constant 0 : i32
    %c0_i32_1 = arith.constant 0 : i32
    return %c0_i32, %c0_i32_0 : i32, i32
  }
  func.func @transform_3(%arg0: i32) -> (i32, i32, i32) {
    %c0_i32 = arith.constant 0 : i32
    %c0_i32_0 = arith.constant 0 : i32
    %c0_i32_1 = arith.constant 0 : i32
    return %arg0, %c0_i32, %c0_i32_0 : i32, i32, i32
  }
}

</mosaic_0001>

<bundles_post_ra>
// kernel: esn_forward_sequence.1
= control target key start
LH: loop header
LB: loop body
LE: loop exit
PB: predicated region body
PF: predicated region fallthrough
CT: control target
= control target key end

     0   :  { %s562_s12 = smov 0   ;;  %s814_s0 = inlined_call_operand.vmem [shape: f32[16,8,128], index: 0, kind: input, shape index: {}]   ;;  %s815_s1 = inlined_call_operand.vmem [shape: f32[8,128], index: 1, kind: input, shape index: {}]   ;;  %s816_s2 = inlined_call_operand.vmem [shape: f32[128,128], index: 2, kind: input, shape index: {}]   ;;  %s817_s3 = inlined_call_operand.vmem [shape: f32[16,8,128], index: 3, kind: output, shape index: {}]  }
   0x1 LB: > { %s484_s13 = sadd.s32 4294967295, %s540_s12   ;;  %p488_p0 = scmp.ge.s32.totalorder %s540_s12, 1  ;;  %s540_s12 = sphi %s562_s12, %s13_s12  }
   0x2   : > { %p138_p1 = scmp.lt.s32.totalorder %s540_s12, 3 }
   0x4   : > { %p139_p2 = pnand %p488_p0, %p138_p1 }
   0x5   : > { %s489_s14 = sshll.u32 (!%p139_p2), %s484_s13, 3  ;;  %p493_p4 = scmp.ne.s32.totalorder (!%p139_p2), %s484_s13, 0 }
   0x6   : > { %142 = sbr.rel (%p139_p2) target bundleno = 1188 (0x4a4), region = 32  ;;  %p163_p3 = scmp.lt.s32.totalorder (!%p139_p2), %s489_s14, 15 }
   0xb   : > { %s819_s14 = smov (!%p163_p3, %s489_s14), 15  ;;  %177 = sbr.rel (%p493_p4) target bundleno = 18 (0x12), region = 36 }
   0xc   : > { %s490_s15 = sshll.u32 %s819_s14, 3 }
   0xd   : > { %s573_s18 = scalar_lea.vmem %s814_s0, %s490_s15  ;;  %s578_s21 = scalar_lea.vmem %s817_s3, %s490_s15 }
  0x10   : > { %v178_v0 = vld [vmem:[%s815_s1] sm:$0xff] }
  0x11   : > { %179 = vst [vmem:[#allocation2] sm:$0xff] %v178_v0 }
  0x12 PF: > { %v586_v1 = vld [vmem:[%s816_s2 + $0x78] sm:$0xff]  ;;  %v591_v2 = vld [vmem:[%s816_s2 + $0x70] sm:$0xff]  ;;  %v598_v3 = vld [vmem:[%s816_s2 + $0x68] sm:$0xff] }
  0x13   : > { %198 = vmatpush.msra.mxu0 %v586_v1  ;;  %226 = vmatpush.msra.mxu1 %v586_v1  ;;  %v607_v4 = vld [vmem:[%s816_s2 + $0x60] sm:$0xff]  ;;  %v616_v5 = vld [vmem:[%s816_s2 + $0x58] sm:$0xff]  ;;  %v625_v6 = vld [vmem:[%s816_s2 + $0x50] sm:$0xff] }
  0x14   : > { %255 = vmatpush.msra.mxu2 %v586_v1  ;;  %284 = vmatpush.msra.mxu3 %v586_v1  ;;  %v634_v7 = vld [vmem:[%s816_s2 + $0x48] sm:$0xff]  ;;  %v643_v8 = vld [vmem:[%s816_s2 + $0x40] sm:$0xff]  ;;  %v652_v9 = vld [vmem:[%s816_s2 + $0x38] sm:$0xff] }
  0x15   : > { %199 = vmatpush.msra.mxu0 %v591_v2  ;;  %227 = vmatpush.msra.mxu1 %v591_v2  ;;  %v661_v10 = vld [vmem:[%s816_s2 + $0x30] sm:$0xff]  ;;  %v670_v11 = vld [vmem:[%s816_s2 + $0x28] sm:$0xff]  ;;  %v679_v12 = vld [vmem:[%s816_s2 + $0x20] sm:$0xff] }
  0x16   : > { %256 = vmatpush.msra.mxu2 %v591_v2  ;;  %285 = vmatpush.msra.mxu3 %v591_v2  ;;  %v688_v13 = vld [vmem:[%s816_s2 + $0x18] sm:$0xff]  ;;  %v697_v14 = vld [vmem:[%s816_s2 + $0x10] sm:$0xff]  ;;  %v706_v15 = vld [vmem:[%s816_s2 + $0x8] sm:$0xff] }
  0x17   : > { %200 = vmatpush.msra.mxu0 %v598_v3  ;;  %228 = vmatpush.msra.mxu1 %v598_v3  ;;  %v715_v16 = vld [vmem:[%s816_s2] sm:$0xff]  ;;  %v494_v25 = vld [vmem:[%s573_s18 + $0x8] sm:$0xff]  ;;  %v496_v32 = vld [vmem:[%s573_s18 + $0x10] sm:$0xff] }
  0x18   : > { %257 = vmatpush.msra.mxu2 %v598_v3  ;;  %286 = vmatpush.msra.mxu3 %v598_v3  ;;  %v720_v17 = vld [vmem:[#allocation2] sm:$0xff]  ;;  %v498_v39 = vld [vmem:[%s573_s18 + $0x18] sm:$0xff]  ;;  %v502_v53 = vld [vmem:[%s573_s18 + $0x28] sm:$0xff] }
  0x19   : > { %201 = vmatpush.msra.mxu0 %v607_v4  ;;  %229 = vmatpush.msra.mxu1 %v607_v4  ;;  %v197_v18 = vld [vmem:[%s573_s18] sm:$0xff]  ;;  %v219_v21 = vmul.f32 0.7, %v720_v17  ;;  %v504_v60 = vld [vmem:[%s573_s18 + $0x30] sm:$0xff] }
  0x1a   : > { %258 = vmatpush.msra.mxu2 %v607_v4  ;;  %287 = vmatpush.msra.mxu3 %v607_v4  ;;  %v500_v46 = vld [vmem:[%s573_s18 + $0x20] sm:$0xff] }
  0x1b   : > { %202 = vmatpush.msra.mxu0 %v616_v5  ;;  %230 = vmatpush.msra.mxu1 %v616_v5 }
  0x1c   : > { %259 = vmatpush.msra.mxu2 %v616_v5  ;;  %288 = vmatpush.msra.mxu3 %v616_v5 }
  0x1d   : > { %203 = vmatpush.msra.mxu0 %v625_v6  ;;  %231 = vmatpush.msra.mxu1 %v625_v6 }
  0x1e   : > { %260 = vmatpush.msra.mxu2 %v625_v6  ;;  %289 = vmatpush.msra.mxu3 %v625_v6 }
  0x1f   : > { %204 = vmatpush.msra.mxu0 %v634_v7  ;;  %232 = vmatpush.msra.mxu1 %v634_v7 }
  0x20   : > { %261 = vmatpush.msra.mxu2 %v634_v7  ;;  %290 = vmatpush.msra.mxu3 %v634_v7 }
  0x21   : > { %205 = vmatpush.msra.mxu0 %v643_v8  ;;  %233 = vmatpush.msra.mxu1 %v643_v8 }
  0x22   : > { %262 = vmatpush.msra.mxu2 %v643_v8  ;;  %291 = vmatpush.msra.mxu3 %v643_v8 }
  0x23   : > { %206 = vmatpush.msra.mxu0 %v652_v9  ;;  %234 = vmatpush.msra.mxu1 %v652_v9 }
  0x24   : > { %263 = vmatpush.msra.mxu2 %v652_v9  ;;  %292 = vmatpush.msra.mxu3 %v652_v9 }
  0x25   : > { %207 = vmatpush.msra.mxu0 %v661_v10  ;;  %235 = vmatpush.msra.mxu1 %v661_v10 }
  0x26   : > { %264 = vmatpush.msra.mxu2 %v661_v10  ;;  %293 = vmatpush.msra.mxu3 %v661_v10 }
  0x27   : > { %208 = vmatpush.msra.mxu0 %v670_v11  ;;  %236 = vmatpush.msra.mxu1 %v670_v11 }
  0x28   : > { %265 = vmatpush.msra.mxu2 %v670_v11  ;;  %294 = vmatpush.msra.mxu3 %v670_v11 }
  0x29   : > { %209 = vmatpush.msra.mxu0 %v679_v12  ;;  %237 = vmatpush.msra.mxu1 %v679_v12 }
  0x2a   : > { %266 = vmatpush.msra.mxu2 %v679_v12  ;;  %295 = vmatpush.msra.mxu3 %v679_v12 }
  0x2b   : > { %210 = vmatpush.msra.mxu0 %v688_v13  ;;  %238 = vmatpush.msra.mxu1 %v688_v13 }
  0x2c   : > { %267 = vmatpush.msra.mxu2 %v688_v13  ;;  %296 = vmatpush.msra.mxu3 %v688_v13 }
  0x2d   : > { %211 = vmatpush.msra.mxu0 %v697_v14  ;;  %239 = vmatpush.msra.mxu1 %v697_v14 }
  0x2e   : > { %268 = vmatpush.msra.mxu2 %v697_v14  ;;  %297 = vmatpush.msra.mxu3 %v697_v14 }
  0x2f   : > { %212 = vmatpush.msra.mxu0 %v706_v15  ;;  %240 = vmatpush.msra.mxu1 %v706_v15 }
  0x30   : > { %269 = vmatpush.msra.mxu2 %v706_v15  ;;  %298 = vmatpush.msra.mxu3 %v706_v15 }
  0x31   : > { %213 = vmatpush.msra.mxu0 %v715_v16  ;;  %241 = vmatpush.msra.mxu1 %v715_v16 }
  0x32   : > { %214 = vmatmul.f32.vlgmr.msra.gmra.mxu0 %v720_v17  ;;  %270 = vmatpush.msra.mxu2 %v715_v16 }
  0x33   : > { %299 = vmatpush.msra.mxu3 %v715_v16  ;;  %313 = vmatpush.msrb.mxu0 %v586_v1 }
  0x34   : > { %342 = vmatpush.msrb.mxu1 %v586_v1  ;;  %371 = vmatpush.msrb.mxu2 %v586_v1 }
  0x35   : > { %314 = vmatpush.msrb.mxu0 %v591_v2  ;;  %400 = vmatpush.msrb.mxu3 %v586_v1 }
  0x36   : > { %343 = vmatpush.msrb.mxu1 %v591_v2  ;;  %372 = vmatpush.msrb.mxu2 %v591_v2 }
  0x37   : > { %315 = vmatpush.msrb.mxu0 %v598_v3  ;;  %401 = vmatpush.msrb.mxu3 %v591_v2 }
  0x38   : > { %344 = vmatpush.msrb.mxu1 %v598_v3  ;;  %373 = vmatpush.msrb.mxu2 %v598_v3 }
  0x39   : > { %316 = vmatpush.msrb.mxu0 %v607_v4  ;;  %402 = vmatpush.msrb.mxu3 %v598_v3  ;;  %v506_v3 = vld [vmem:[%s573_s18 + $0x38] sm:$0xff] }
  0x3a   : > { %345 = vmatpush.msrb.mxu1 %v607_v4  ;;  %374 = vmatpush.msrb.mxu2 %v607_v4 }
  0x3b   : > { %317 = vmatpush.msrb.mxu0 %v616_v5  ;;  %403 = vmatpush.msrb.mxu3 %v607_v4 }
  0x3c   : > { %346 = vmatpush.msrb.mxu1 %v616_v5  ;;  %375 = vmatpush.msrb.mxu2 %v616_v5 }
  0x3d   : > { %318 = vmatpush.msrb.mxu0 %v625_v6  ;;  %404 = vmatpush.msrb.mxu3 %v616_v5 }
  0x3e   : > { %347 = vmatpush.msrb.mxu1 %v625_v6  ;;  %376 = vmatpush.msrb.mxu2 %v625_v6 }
  0x3f   : > { %319 = vmatpush.msrb.mxu0 %v634_v7  ;;  %405 = vmatpush.msrb.mxu3 %v625_v6 }
  0x40   : > { %348 = vmatpush.msrb.mxu1 %v634_v7  ;;  %377 = vmatpush.msrb.mxu2 %v634_v7 }
  0x41   : > { %320 = vmatpush.msrb.mxu0 %v643_v8  ;;  %406 = vmatpush.msrb.mxu3 %v634_v7 }
  0x42   : > { %349 = vmatpush.msrb.mxu1 %v643_v8  ;;  %378 = vmatpush.msrb.mxu2 %v643_v8 }
  0x43   : > { %321 = vmatpush.msrb.mxu0 %v652_v9  ;;  %407 = vmatpush.msrb.mxu3 %v643_v8 }
  0x44   : > { %350 = vmatpush.msrb.mxu1 %v652_v9  ;;  %379 = vmatpush.msrb.mxu2 %v652_v9 }
  0x45   : > { %322 = vmatpush.msrb.mxu0 %v661_v10  ;;  %408 = vmatpush.msrb.mxu3 %v652_v9 }
  0x46   : > { %351 = vmatpush.msrb.mxu1 %v661_v10  ;;  %380 = vmatpush.msrb.mxu2 %v661_v10 }
  0x47   : > { %323 = vmatpush.msrb.mxu0 %v670_v11  ;;  %409 = vmatpush.msrb.mxu3 %v661_v10 }
  0x48   : > { %352 = vmatpush.msrb.mxu1 %v670_v11  ;;  %381 = vmatpush.msrb.mxu2 %v670_v11 }
  0x49   : > { %324 = vmatpush.msrb.mxu0 %v679_v12  ;;  %410 = vmatpush.msrb.mxu3 %v670_v11 }
  0x4a   : > { %353 = vmatpush.msrb.mxu1 %v679_v12  ;;  %382 = vmatpush.msrb.mxu2 %v679_v12 }
  0x4b   : > { %325 = vmatpush.msrb.mxu0 %v688_v13  ;;  %411 = vmatpush.msrb.mxu3 %v679_v12 }
  0x4c   : > { %354 = vmatpush.msrb.mxu1 %v688_v13  ;;  %383 = vmatpush.msrb.mxu2 %v688_v13 }
  0x4d   : > { %326 = vmatpush.msrb.mxu0 %v697_v14  ;;  %412 = vmatpush.msrb.mxu3 %v688_v13 }
  0x4e   : > { %355 = vmatpush.msrb.mxu1 %v697_v14  ;;  %384 = vmatpush.msrb.mxu2 %v697_v14 }
  0x4f   : > { %327 = vmatpush.msrb.mxu0 %v706_v15  ;;  %413 = vmatpush.msrb.mxu3 %v697_v14 }
  0x50   : > { %356 = vmatpush.msrb.mxu1 %v706_v15  ;;  %385 = vmatpush.msrb.mxu2 %v706_v15 }
  0x51   : > { %328 = vmatpush.msrb.mxu0 %v715_v16  ;;  %414 = vmatpush.msrb.mxu3 %v706_v15 }
  0x52   : > { %357 = vmatpush.msrb.mxu1 %v715_v16  ;;  %386 = vmatpush.msrb.mxu2 %v715_v16 }
  0x53   : > { %415 = vmatpush.msrb.mxu3 %v715_v16 }
  0xaf   : > { %v215_v19 = vpop.f32.mrf.mxu0 }
  0xb0   : > { %v218_v20 = vadd.f32 %v215_v19, %v197_v18 }
  0xb2   : > { %518 = vtanh.f32 %v218_v20 }
  0xb8   : > { %v519_v22 = vpop.eup %518 }
  0xb9   : > { %v221_v23 = vmul.f32 0.3, %v519_v22 }
  0xbb   : > { %v222_v24 = vadd.f32 %v221_v23, %v219_v21 }
  0xbd   : > { %223 = vst [vmem:[%s578_s21] sm:$0xff] %v222_v24  ;;  %242 = vmatmul.f32.vlgmr.msra.gmra.mxu1 %v222_v24  ;;  %v247_v30 = vmul.f32 0.7, %v222_v24 }
 0x13a   : > { %v243_v26 = vpop.f32.mrf.mxu1 }
 0x13b   : > { %v246_v27 = vadd.f32 %v494_v25, %v243_v26 }
 0x13d   : > { %520 = vtanh.f32 %v246_v27 }
 0x143   : > { %v521_v28 = vpop.eup %520 }
 0x144   : > { %v249_v29 = vmul.f32 0.3, %v521_v28 }
 0x146   : > { %v250_v31 = vadd.f32 %v249_v29, %v247_v30 }
 0x148   : > { %495 = vst [vmem:[%s578_s21 + $0x8] sm:$0xff] %v250_v31  ;;  %271 = vmatmul.f32.vlgmr.msra.gmra.mxu2 %v250_v31  ;;  %v276_v37 = vmul.f32 0.7, %v250_v31 }
 0x1cb   : > { %v272_v33 = vpop.f32.mrf.mxu2 }
 0x1cc   : > { %v275_v34 = vadd.f32 %v496_v32, %v272_v33 }
 0x1ce   : > { %522 = vtanh.f32 %v275_v34 }
 0x1d4   : > { %v523_v35 = vpop.eup %522 }
 0x1d5   : > { %v278_v36 = vmul.f32 0.3, %v523_v35 }
 0x1d7   : > { %v279_v38 = vadd.f32 %v278_v36, %v276_v37 }
 0x1d9   : > { %497 = vst [vmem:[%s578_s21 + $0x10] sm:$0xff] %v279_v38  ;;  %300 = vmatmul.f32.vlgmr.msra.gmra.mxu3 %v279_v38  ;;  %v305_v44 = vmul.f32 0.7, %v279_v38 }
 0x25c   : > { %v301_v40 = vpop.f32.mrf.mxu3 }
 0x25d   : > { %v304_v41 = vadd.f32 %v498_v39, %v301_v40 }
 0x25f   : > { %524 = vtanh.f32 %v304_v41 }
 0x265   : > { %v525_v42 = vpop.eup %524 }
 0x266   : > { %v307_v43 = vmul.f32 0.3, %v525_v42 }
 0x268   : > { %v308_v45 = vadd.f32 %v307_v43, %v305_v44 }
 0x26a   : > { %499 = vst [vmem:[%s578_s21 + $0x18] sm:$0xff] %v308_v45  ;;  %329 = vmatmul.f32.vlgmr.msrb.gmra.mxu0 %v308_v45  ;;  %v334_v51 = vmul.f32 0.7, %v308_v45 }
 0x2e7   : > { %v330_v47 = vpop.f32.mrf.mxu0 }
 0x2e8   : > { %v333_v48 = vadd.f32 %v500_v46, %v330_v47 }
 0x2ea   : > { %526 = vtanh.f32 %v333_v48 }
 0x2f0   : > { %v527_v49 = vpop.eup %526 }
 0x2f1   : > { %v336_v50 = vmul.f32 0.3, %v527_v49 }
 0x2f3   : > { %v337_v52 = vadd.f32 %v336_v50, %v334_v51 }
 0x2f5   : > { %501 = vst [vmem:[%s578_s21 + $0x20] sm:$0xff] %v337_v52  ;;  %358 = vmatmul.f32.vlgmr.msrb.gmra.mxu1 %v337_v52  ;;  %v363_v58 = vmul.f32 0.7, %v337_v52 }
 0x372   : > { %v359_v54 = vpop.f32.mrf.mxu1 }
 0x373   : > { %v362_v55 = vadd.f32 %v502_v53, %v359_v54 }
 0x375   : > { %528 = vtanh.f32 %v362_v55 }
 0x37b   : > { %v529_v56 = vpop.eup %528 }
 0x37c   : > { %v365_v57 = vmul.f32 0.3, %v529_v56 }
 0x37e   : > { %v366_v59 = vadd.f32 %v365_v57, %v363_v58 }
 0x380   : > { %503 = vst [vmem:[%s578_s21 + $0x28] sm:$0xff] %v366_v59  ;;  %387 = vmatmul.f32.vlgmr.msrb.gmra.mxu2 %v366_v59  ;;  %v392_v1 = vmul.f32 0.7, %v366_v59 }
 0x403   : > { %v388_v61 = vpop.f32.mrf.mxu2 }
 0x404   : > { %v391_v62 = vadd.f32 %v504_v60, %v388_v61 }
 0x406   : > { %530 = vtanh.f32 %v391_v62 }
 0x40c   : > { %v531_v63 = vpop.eup %530 }
 0x40d   : > { %v394_v0 = vmul.f32 0.3, %v531_v63 }
 0x40f   : > { %v395_v2 = vadd.f32 %v394_v0, %v392_v1 }
 0x411   : > { %505 = vst [vmem:[%s578_s21 + $0x30] sm:$0xff] %v395_v2  ;;  %416 = vmatmul.f32.vlgmr.msrb.gmra.mxu3 %v395_v2  ;;  %v421_v7 = vmul.f32 0.7, %v395_v2 }
 0x494   : > { %v417_v4 = vpop.f32.mrf.mxu3 }
 0x495   : > { %v420_v5 = vadd.f32 %v506_v3, %v417_v4 }
 0x497   : > { %532 = vtanh.f32 %v420_v5 }
 0x49d   : > { %v533_v6 = vpop.eup %532 }
 0x49e   : > { %v423_v8 = vmul.f32 0.3, %v533_v6 }
 0x4a0   : > { %v424_v9 = vadd.f32 %v423_v8, %v421_v7 }
 0x4a2   : > { %507 = vst [vmem:[%s578_s21 + $0x38] sm:$0xff] %v424_v9 }
 0x4a3   : > { %427 = vst [vmem:[#allocation2] sm:$0xff] %v424_v9 }
 0x4a4 PF: > { %s13_s12 = sadd.s32 1, %s540_s12  }
 0x4a5   : > { %p10_p5 = scmp.ge.s32.totalorder %s13_s12, 4  }
 0x4a7   :  { %12 = sbr.rel (!%p10_p5) target bundleno = 1 (0x1), region = 80 }

</bundles_post_ra>
